<compile_context>
chip_gen: v7x
topology: tpu7x:2x2x1
jax: 0.10.0
libtpu: 0.0.40
codegen_flags: <defaults>
</compile_context>

<pallas_src>
import math
import functools

import jax
import jax.numpy as jnp
from jax.experimental import pallas as pl
from jax.experimental.pallas import tpu as pltpu


_LANES = 128


def _tape_eval_kernel(x_ref, pe_ref, o_ref):
    # x_ref: (TB, TR, C), pe_ref: (TR, C) -> broadcast add over the batch-tile dim.
    o_ref[...] = x_ref[...] + pe_ref[...][None]


def _tape_train_kernel(threshold_i32, inv_keep, batch_stride,
                       seed_ref, x_ref, pe_ref, o_ref):
    """out = inverted-dropout(x + pe).

    Keep decisions come from a lowbias32 hash of the global element index
    (all wrapping int32 arithmetic == uint32 bit patterns).  The hash output
    is uniform over all 32-bit patterns, so `keep iff h >= threshold` with
    threshold = round(p * 2^32) - 2^31 (signed compare) gives P(keep) = 1 - p.
    """
    y = x_ref[...] + pe_ref[...][None]
    tb, tr, c = x_ref.shape

    r_base = pl.program_id(0) * tr        # row-tile offset   (outer grid axis)
    b_base = pl.program_id(1) * tb        # batch-tile offset (inner grid axis)

    # Global linear element index (tile-independent, hence reproducible mask).
    lin = (jax.lax.broadcasted_iota(jnp.int32, y.shape, 1) + r_base) * jnp.int32(c)
    lin = lin + jax.lax.broadcasted_iota(jnp.int32, y.shape, 2)
    if tb > 1:
        lin = lin + (jax.lax.broadcasted_iota(jnp.int32, y.shape, 0) + b_base) \
            * jnp.int32(batch_stride)
    else:  # common large-activation regime: skip the batch iota entirely
        lin = lin + b_base * jnp.int32(batch_stride)

    # lowbias32 avalanche hash of (index ^ seed).
    # TODO(synk): for bf16/fp8 inputs on v7x, draw one 32-bit hash per two
    # elements and compare both 16-bit halves to halve PRNG/compare work.
    s16 = jnp.int32(16)
    s15 = jnp.int32(15)
    h = lin ^ seed_ref[0]
    h = (h ^ jax.lax.shift_right_logical(h, s16)) * jnp.int32(0x7FEB352D)
    h = (h ^ jax.lax.shift_right_logical(h, s15)) * jnp.int32(-2073385333)  # 0x846CA68B
    h = h ^ jax.lax.shift_right_logical(h, s16)

    keep = h >= jnp.int32(threshold_i32)
    # TODO(synk): torch.nn.Dropout's RNG bit pattern cannot be reproduced; the
    # keep-probability and inverted scaling match, the individual mask differs.
    o_ref[...] = jnp.where(keep, y * inv_keep, 0.0).astype(o_ref.dtype)


def make_tape_pe(d_model, max_len, scale_factor=1.0, dtype=jnp.float32):
    """Deterministic construction of the tAPE buffer, matching the PyTorch __init__."""
    position = jnp.arange(max_len, dtype=jnp.float32)[:, None]            # (L, 1)
    div_term = jnp.exp(
        jnp.arange(0, d_model, 2, dtype=jnp.float32) * (-math.log(10000.0) / d_model)
    )                                                                     # (D/2,)
    angles = position * div_term * (d_model / max_len)                    # (L, D/2)
    pe = jnp.zeros((max_len, d_model), dtype=jnp.float32)
    pe = pe.at[:, 0::2].set(jnp.sin(angles))
    pe = pe.at[:, 1::2].set(jnp.cos(angles))
    return (scale_factor * pe).astype(dtype)                              # (L, D)


def tape_forward(x, pe, *, dropout_p=0.1, training=False, seed=0,
                 block_bytes=4 << 20):
    """x: [B, L, D], pe: [L, D] (L must equal max_len, as in the PyTorch module)."""
    B, L, D = x.shape
    assert pe.shape == (L, D), "PyTorch `x + self.pe` requires L == max_len"

    # Match dtypes: keeps the add in the input dtype and halves pe HBM traffic
    # for low-precision inputs.
    pe = pe.astype(x.dtype)
    dtype_bytes = jnp.dtype(x.dtype).itemsize

    # Lane-dense view: last dim becomes 128 when L*D is a multiple of 128.
    lane_dense = (L * D) % _LANES == 0
    if lane_dense:
        R, C = (L * D) // _LANES, _LANES
        x3 = x.reshape(B, R, C)
        pe2 = pe.reshape(R, C)
    else:
        # Fallback: keep (L, D) as the last two dims (full extents are legal blocks).
        R, C = L, D
        x3, pe2 = x, pe

    # Dtype-aware sublane multiple: 8 (f32), 16 (bf16/f16), 32 (int8/fp8).
    sub = max(8, (8 * 4) // dtype_bytes)

    # Row tile: biggest second-minor tile (multiple of `sub`, or the full
    # extent) that keeps one block within the byte budget.
    row_bytes = C * dtype_bytes
    max_rows = max(sub, block_bytes // row_bytes)
    TR = R if R <= max_rows else (max_rows // sub) * sub

    # Batch tile: pack as many batches per block as the byte budget allows.
    TB = max(1, min(B, block_bytes // max(1, TR * row_bytes)))

    # Batch tiles innermost -> pe's block index is constant across the inner
    # loop and its re-fetch is elided.
    grid = (pl.cdiv(R, TR), pl.cdiv(B, TB))

    out_shape = jax.ShapeDtypeStruct(x3.shape, x.dtype)

    # Explicit VMEM budget: double-buffered x + out + pe blocks (+ headroom).
    # ~24 MiB with the 4 MiB default -> fits every generation (incl. v7x 64 MiB
    # physical) and overrides v5e's 16 MiB scoped default.
    blk_bytes = TB * TR * row_bytes
    pe_blk_bytes = TR * row_bytes
    vmem_needed = 2 * (2 * blk_bytes + pe_blk_bytes) + (4 << 20)
    compiler_params = pltpu.CompilerParams(
        dimension_semantics=("parallel", "parallel"),
        vmem_limit_bytes=max(vmem_needed, 32 << 20),
    )

    if training and dropout_p > 0.0:
        p = float(dropout_p)
        # Signed threshold: keep iff i32(hash) >= round(p*2^32) - 2^31  <=>  P(keep)=1-p.
        threshold_i32 = min(int(round(p * 2.0 ** 32)), (1 << 32) - 1) - (1 << 31)
        inv_keep = (1.0 / (1.0 - p)) if p < 1.0 else 0.0
        # Per-batch linear stride, reduced into int32 range (wrapping is fine).
        batch_stride = (R * C) & 0xFFFFFFFF
        if batch_stride >= (1 << 31):
            batch_stride -= (1 << 32)
        kernel = functools.partial(
            _tape_train_kernel, threshold_i32, inv_keep, batch_stride)
        seed_arr = jnp.asarray([seed], dtype=jnp.int32)

        grid_spec = pltpu.PrefetchScalarGridSpec(
            num_scalar_prefetch=1,            # seed -> SMEM
            grid=grid,
            in_specs=[
                pl.BlockSpec((TB, TR, C), lambda r, b, s: (b, r, 0)),
                pl.BlockSpec((TR, C), lambda r, b, s: (r, 0)),
            ],
            out_specs=pl.BlockSpec((TB, TR, C), lambda r, b, s: (b, r, 0)),
        )
        out3 = pl.pallas_call(
            kernel,
            out_shape=out_shape,
            grid_spec=grid_spec,
            input_output_aliases={1: 0},      # donate x (index 1 after the seed)
            compiler_params=compiler_params,
        )(seed_arr, x3, pe2)
    else:
        out3 = pl.pallas_call(
            _tape_eval_kernel,
            out_shape=out_shape,
            grid=grid,
            in_specs=[
                pl.BlockSpec((TB, TR, C), lambda r, b: (b, r, 0)),
                pl.BlockSpec((TR, C), lambda r, b: (r, 0)),
            ],
            out_specs=pl.BlockSpec((TB, TR, C), lambda r, b: (b, r, 0)),
            input_output_aliases={0: 0},      # donate x
            compiler_params=compiler_params,
        )(x3, pe2)

    return out3.reshape(B, L, D) if lane_dense else out3


if __name__ == "__main__":
    # Small shapes consistent with the module: d_model=32, max_len=seq_len=16, batch=2.
    B, L, D = 2, 16, 32
    key = jax.random.PRNGKey(0)
    x = jax.random.normal(key, (B, L, D), dtype=jnp.float32)

    pe = make_tape_pe(d_model=D, max_len=L, scale_factor=1.0, dtype=x.dtype)
    ref = x + pe[None]

    # Eval mode: dropout is the identity (matches PyTorch .eval()).
    out = jax.block_until_ready(tape_forward(x, pe, dropout_p=0.1, training=False))
    assert out.shape == (B, L, D)
    assert jnp.allclose(out, ref, atol=1e-6), "eval-mode mismatch vs reference"

    # Training mode: inverted dropout (mask bits differ from torch RNG, as expected).
    p = 0.1
    out_tr = jax.block_until_ready(
        tape_forward(x, pe, dropout_p=p, training=True, seed=123))
    assert out_tr.shape == (B, L, D)
    scaled = ref * (1.0 / (1.0 - p))
    ok = jnp.isclose(out_tr, 0.0, atol=1e-6) | jnp.isclose(out_tr, scaled,
                                                           rtol=1e-5, atol=1e-5)
    assert bool(jnp.all(ok)), "train-mode values must be 0 or (x+pe)/(1-p)"
    keep_rate = float(jnp.mean((out_tr != 0).astype(jnp.float32)))
    assert 0.75 < keep_rate < 0.98, f"keep rate {keep_rate} far from {1-p}"

    print("KERNEL_OK")
</pallas_src>

<mosaic_0001>
module attributes {stable_mosaic.version = 11 : i64} {
  func.func @_tape_eval_kernel(%arg0: i32, %arg1: i32, %arg2: memref<2x4x128xf32, #tpu.memory_space<vmem>>, %arg3: memref<4x128xf32, #tpu.memory_space<vmem>>, %arg4: memref<2x4x128xf32, #tpu.memory_space<vmem>>) attributes {dimension_semantics = [#tpu.dimension_semantics<parallel>, #tpu.dimension_semantics<parallel>], iteration_bounds = array<i64: 1, 1>, scalar_prefetch = 0 : i64, scratch_operands = 0 : i64, tpu.core_type = #tpu.core_type<tc>, window_params = [{transform_indices = @transform_0, window_bounds = array<i64: 2, 4, 128>}, {transform_indices = @transform_1, window_bounds = array<i64: 4, 128>}, {transform_indices = @transform_2, window_bounds = array<i64: 2, 4, 128>}]} {
    %c0 = arith.constant 0 : index
    %c0_0 = arith.constant 0 : index
    %c0_1 = arith.constant 0 : index
    %0 = vector.load %arg2[%c0, %c0_0, %c0_1] : memref<2x4x128xf32, #tpu.memory_space<vmem>>, vector<2x4x128xf32>
    %c0_2 = arith.constant 0 : index
    %c0_3 = arith.constant 0 : index
    %1 = vector.load %arg3[%c0_2, %c0_3] : memref<4x128xf32, #tpu.memory_space<vmem>>, vector<4x128xf32>
    %2 = vector.shape_cast %1 : vector<4x128xf32> to vector<1x4x128xf32>
    %3 = vector.broadcast %2 : vector<1x4x128xf32> to vector<2x4x128xf32>
    %4 = arith.addf %0, %3 : vector<2x4x128xf32>
    %c0_4 = arith.constant 0 : index
    %c0_5 = arith.constant 0 : index
    %c0_6 = arith.constant 0 : index
    %5 = vector.load %arg4[%c0_4, %c0_5, %c0_6] : memref<2x4x128xf32, #tpu.memory_space<vmem>>, vector<2x4x128xf32>
    tpu.vector_store %arg4[%c0_4, %c0_5, %c0_6], %4 {strides = array<i32>} : memref<2x4x128xf32, #tpu.memory_space<vmem>>, vector<2x4x128xf32>,
    return
  }
  func.func @transform_0(%arg0: i32, %arg1: i32) -> (i32, i32, i32) {
    %c0_i32 = arith.constant 0 : i32
    %c0_i32_0 = arith.constant 0 : i32
    return %arg1, %arg0, %c0_i32 : i32, i32, i32
  }
  func.func @transform_1(%arg0: i32, %arg1: i32) -> (i32, i32) {
    %c0_i32 = arith.constant 0 : i32
    %c0_i32_0 = arith.constant 0 : i32
    return %arg0, %c0_i32 : i32, i32
  }
  func.func @transform_2(%arg0: i32, %arg1: i32) -> (i32, i32, i32) {
    %c0_i32 = arith.constant 0 : i32
    %c0_i32_0 = arith.constant 0 : i32
    return %arg1, %arg0, %c0_i32 : i32, i32, i32
  }
}

</mosaic_0001>

<bundles_post_ra>
// kernel: tpu_custom_call.1
= control target key start
LH: loop header
LB: loop body
LE: loop exit
PB: predicated region body
PF: predicated region fallthrough
CT: control target
= control target key end

     0   :  { %7 = vsyncpa [#allocation3], 0  ;;  %s154_s0 = inlined_call_operand.hbm [shape: f32[2,4,128], index: 0, kind: input, shape index: {}, may-alias: {0,2}]   ;;  %s155_s1 = inlined_call_operand.vmem [shape: f32[4,128], index: 1, kind: input, shape index: {}]   ;;  %s156_s2 = inlined_call_operand.hbm [shape: f32[2,4,128], index: 2, kind: output, shape index: {}, may-alias: {0,2}]  }
   0x1   :  { %8 = vsyncpa [#allocation4], 0  ;;  %s102_s9 = smov [#allocation2]   ;;  %s54_s13 = scalar_lea.hbm %s154_s0, 128 }
   0x2   :  { %s14_s10 = sshll.u32 %s102_s9, 4  ;;  %p55_p0 = scmp.ne.s32.totalorder %s154_s0, %s54_s13  ;;  %s15_s10 = int_to_ptr.vmem [resolvable:$true] %s14_s10 }
   0x3   :  { %p58_p1 = scmp.lt.u32.totalorder %s54_s13, %s154_s0 }
   0x5   :  { %p60_p2 = pnand %p58_p1, %p55_p0 }
   0x7   :  { %63 = shalt.err (!%p60_p2)
}
   0x8   :  { %s64_s18 = scalar_lea.vmem %s15_s10, 128  ;;  %p69_p4 = scmp.lt.s32.totalorder %s15_s10, %s15_s10 }
   0x9   :  { %p65_p3 = scmp.ne.s32.totalorder %s15_s10, %s64_s18  ;;  %p70_p5 = scmp.lt.s32.totalorder %s64_s18, %s64_s18 }
   0xb   :  { %p71_p6 = por %p70_p5, %p69_p4 }
   0xd   :  { %p72_p7 = pnand %p71_p6, %p65_p3 }
   0xf   :  { %75 = shalt.err (!%p72_p7)
}
  0x10   :  { %s103_s19 = smov 64   ;;  %s104_s20 = smov 4  }
  0x11   :  { %20 = dma.hbm_to_vmem [thread:$0]  %s154_s0, 128, %s15_s10, [#allocation3], %s103_s19, %s103_s19, %s104_s20  }
  0x12   :  { %98 = dma.done.wait [#allocation3], 128  }
  0x13   :  { %99 = vsyncadd [#allocation3], 4294967168  ;;  %s105_s23 = smov [#allocation5]   ;;  %v26_v0 = vld [vmem:[#allocation2] sm:$0xf] }
  0x14   :  { %s38_s24 = sshll.u32 %s105_s23, 4  ;;  %v28_v1 = vld [vmem:[%s155_s1] sm:$0xf]  ;;  %v27_v2 = vld [vmem:[#allocation2 + $0x4] sm:$0xf]  ;;  %s39_s24 = int_to_ptr.vmem [resolvable:$true] %s38_s24 }
  0x15   :  { %v29_v3 = vadd.f32 %v28_v1, %v26_v0  ;;  %v30_v4 = vadd.f32 %v28_v1, %v27_v2  ;;  %s76_s27 = scalar_lea.vmem %s39_s24, 128  ;;  %p81_p9 = scmp.lt.s32.totalorder %s39_s24, %s39_s24 }
  0x16   :  { %p77_p8 = scmp.ne.s32.totalorder %s39_s24, %s76_s27  ;;  %p82_p10 = scmp.lt.s32.totalorder %s76_s27, %s76_s27 }
  0x17   :  { %31 = vst [vmem:[#allocation5] sm:$0xf] %v29_v3  ;;  %32 = vst [vmem:[#allocation5 + $0x4] sm:$0xf] %v30_v4 }
  0x18   :  { %p83_p11 = por %p82_p10, %p81_p9 }
  0x1a   :  { %p84_p12 = pnand %p83_p11, %p77_p8 }
  0x1c   :  { %87 = shalt.err (!%p84_p12)
}
  0x1d   :  { %s88_s29 = scalar_lea.hbm %s156_s2, 128 }
  0x1e   :  { %p89_p13 = scmp.ne.s32.totalorder %s156_s2, %s88_s29  ;;  %p92_p0 = scmp.lt.u32.totalorder %s88_s29, %s156_s2 }
  0x20   :  { %p94_p1 = pnand %p92_p0, %p89_p13 }
  0x22   :  { %97 = shalt.err (!%p94_p1)
}
  0x23   :  { %44 = dma.vmem_to_hbm [thread:$0]  %s39_s24, 128, %s156_s2, [#allocation4], %s103_s19, %s103_s19, %s104_s20  }
  0x24   :  { %100 = dma.done.wait [#allocation4], 128  }
  0x25   :  { %101 = vsyncadd [#allocation4], 4294967168 }
  0x26   :  { %48 = vsyncpa [#allocation3], 1 }
  0x27   :  { %49 = vsyncpa [#allocation4], 1 }

</bundles_post_ra>
